<compile_context>
chip_gen: v6e
topology: v6e:2x2x1
jax: 0.10.0
libtpu: 0.0.40
codegen_flags: <defaults>
</compile_context>

<pallas_src>
import functools

import jax
import jax.numpy as jnp
from jax.experimental import pallas as pl
from jax.experimental.pallas import tpu as pltpu

NEG_INF = -9e15  # only used by the pure-JAX reference


# --------------------------------------------------------------------------
# Kernel 0: fused node projection (all heads + folded attention vectors)
# --------------------------------------------------------------------------
def _proj_kernel(x_ref, w_ref, wh_ref, ep_ref, *, HW):
    """x:(N,F) @ w:(F, HW+2*nheads) -> wh:(N,HW), ep:(N,2*nheads).

    The trailing 2*nheads columns of w are W_h @ a_src_h / W_h @ a_dst_h, so the
    per-node attention scores come out of the same MXU matmul as the features.
    """
    xw = jnp.dot(x_ref[...], w_ref[...], preferred_element_type=jnp.float32)
    wh_ref[...] = xw[:, :HW]
    ep_ref[...] = xw[:, HW:]


# --------------------------------------------------------------------------
# Kernel 1: all attention heads for one tile of tN query rows
# --------------------------------------------------------------------------
def _heads_kernel(wh_ref, ep_all_ref, ep_tile_ref, mask_ref, wo_ref, who_ref,
                  *, alpha, P, nheads, H):
    tN, C = who_ref.shape
    N = mask_ref.shape[2]

    maskf = mask_ref[...].astype(jnp.float32)            # (P, tN, N) 0/1, shared by all heads
    wh_all = wh_ref[...]                                 # (N, nheads*H)  keys (full N)
    ep_all = ep_all_ref[...]                              # (N, 2*nheads)  e_dst source
    ep_tile = ep_tile_ref[...]                            # (tN, 2*nheads) e_src (query rows)
    wo_all = wo_ref[...].astype(jnp.float32)              # (nheads, P, H, C)

    acc = jnp.zeros((tN, C), jnp.float32)

    # TODO(synk): convert to lax.fori_loop if nheads grows beyond ~4.
    for h in range(nheads):
        wh = wh_all[:, h * H:(h + 1) * H]                 # (N, H)
        e = ep_tile[:, 2 * h:2 * h + 1] + ep_all[:, 2 * h + 1:2 * h + 2].T   # (tN, N)
        e = jnp.where(e > 0, e, alpha * e)                # LeakyReLU(alpha)

        # exp hoisted out of the P channel axis (shift-invariant softmax):
        # tN*N transcendentals per head instead of P*tN*N.
        m = jnp.max(e, axis=-1, keepdims=True)
        E = jnp.exp(e - m)                                # (tN, N)
        num = maskf * E[None, :, :]                       # (P, tN, N)
        denom = jnp.sum(num, axis=-1, keepdims=True)      # (P, tN, 1)
        denom = jnp.maximum(denom, 1e-30)                 # guard fully-masked rows
        att = num * pl.reciprocal(denom)                  # exact recip on a tiny tensor

        # Flattened (P*tN, N) @ (N, H) attention matmul (layout-free reshape:
        # tN % 8 == 0), then ELU (concat=True head).
        hp = jnp.dot(att.reshape(P * tN, N), wh, preferred_element_type=jnp.float32)
        hp = jnp.where(hp > 0, hp, jnp.expm1(hp))
        hp = hp.reshape(P, tN, H)

        # This head's row block of Wo: batched matmul + channel sum ==
        # cat-over-channels(ELU(h'_p)) @ Wo[head-h rows]; avoids materializing
        # the (tN, nheads*P*H) concat.
        contrib = jnp.einsum('pnh,phc->pnc', hp, wo_all[h],
                             preferred_element_type=jnp.float32)     # (P, tN, C)
        acc = acc + jnp.sum(contrib, axis=0)

    who_ref[...] = acc


# --------------------------------------------------------------------------
# Kernel 2: output attention layer (concat=False) + ELU + log_softmax
# --------------------------------------------------------------------------
def _out_kernel(who_full_ref, who_tile_ref, mask_ref, ao_ref, out_ref, *, alpha, P):
    maskf = mask_ref[...].astype(jnp.float32)            # (P, tN, N)
    who_full = who_full_ref[...]                          # (N, C)   keys (full N)
    who_tile = who_tile_ref[...]                          # (tN, C)  query rows
    ao = ao_ref[...]                                      # (C, 2)

    ep_full = jnp.dot(who_full, ao, preferred_element_type=jnp.float32)   # (N, 2)
    ep_tile = jnp.dot(who_tile, ao, preferred_element_type=jnp.float32)   # (tN, 2)
    e = ep_tile[:, 0:1] + ep_full[:, 1:2].T               # (tN, N)
    e = jnp.where(e > 0, e, alpha * e)                    # LeakyReLU

    m = jnp.max(e, axis=-1, keepdims=True)
    E = jnp.exp(e - m)
    num = maskf * E[None, :, :]                           # (P, tN, N)
    denom = jnp.maximum(jnp.sum(num, axis=-1, keepdims=True), 1e-30)
    # concat=False: mean over channels.  By linearity,
    # mean_p(att_p @ Wh) == (mean_p att_p) @ Wh -> a single matmul.
    att_mean = jnp.sum(num * pl.reciprocal(denom), axis=0) * (1.0 / P)    # (tN, N)
    h_prime = jnp.dot(att_mean, who_full, preferred_element_type=jnp.float32)
    hh = jnp.where(h_prime > 0, h_prime, jnp.expm1(h_prime))             # F.elu in GAT.forward

    mx = jnp.max(hh, axis=1, keepdims=True)               # exact log_softmax(dim=1)
    z = hh - mx
    lse = jnp.log(jnp.sum(jnp.exp(z), axis=1, keepdims=True))
    out_ref[...] = z - lse


# --------------------------------------------------------------------------
# Wrapper
# --------------------------------------------------------------------------
def gat_forward(x, edge_attr, params, *, alpha, tN=None):
    """params = {'heads': [(W, a_src, a_dst), ...], 'out': (W, a_src, a_dst)}"""
    N, F = x.shape
    P = edge_attr.shape[0]
    heads = params["heads"]
    nheads = len(heads)
    H = heads[0][0].shape[1]
    Wo, ao_src, ao_dst = params["out"]
    C = Wo.shape[1]
    HW = nheads * H

    # ---- per-generation VMEM budget & row-tile size ----
    try:
        vmem_cap = int(pltpu.get_tpu_info().vmem_capacity_bytes)
    except Exception:                                     # pragma: no cover
        vmem_cap = 128 * 1024 * 1024
    vmem_limit = min(int(vmem_cap * 3 // 4), 100 * 1024 * 1024)

    n_up8 = ((N + 7) // 8) * 8
    if tN is None:
        # rough live bytes per query row in kernel 1:
        # mask tile bf16 double-buffered (2*2) + f32 mask + f32 num ~= 12 B * P * N
        per_row = 12 * P * max(N, 1)
        tN = (vmem_limit // 2) // per_row
        tN = int(max(8, min(256, (tN // 8) * 8)))
    tN = int(max(8, min((tN // 8) * 8, n_up8)))
    N_pad = ((N + tN - 1) // tN) * tN
    nt = N_pad // tN

    # ---- host-side packing (cheap, one-time) ----
    xp = x.astype(jnp.float32)
    # Only the >0 pattern of edge_attr is ever used (masking); carry it as a
    # bf16 0/1 mask -> half the DMA bytes / VMEM of a f32 edge tensor.
    mask = (edge_attr > 0).astype(jnp.bfloat16)
    if N_pad != N:
        xp = jnp.pad(xp, ((0, N_pad - N), (0, 0)))
        mask = jnp.pad(mask, ((0, 0), (0, N_pad - N), (0, N_pad - N)))

    w_all = jnp.concatenate([W for (W, _, _) in heads], axis=1)            # (F, HW)
    a_proj = jnp.concatenate(
        [jnp.stack([W @ a_s[0], W @ a_d[0]], axis=1) for (W, a_s, a_d) in heads],
        axis=1)                                                            # (F, 2*nheads)
    w_cat = jnp.concatenate([w_all, a_proj], axis=1).astype(jnp.float32)   # (F, HW+2*nheads)
    wo_r = Wo.reshape(nheads, P, H, C).astype(jnp.float32)
    ao_pair = jnp.stack([ao_src[0], ao_dst[0]], axis=-1).astype(jnp.float32)   # (C, 2)

    vmem = pl.BlockSpec(memory_space=pltpu.MemorySpace.VMEM)
    cp_serial = pltpu.CompilerParams(vmem_limit_bytes=vmem_limit)
    cp_rows = pltpu.CompilerParams(dimension_semantics=("parallel",),
                                   vmem_limit_bytes=vmem_limit)

    # ---- kernel 0: node projection (all heads + attention vectors fused) ----
    wh_all, ep_all = pl.pallas_call(
        functools.partial(_proj_kernel, HW=HW),
        out_shape=(jax.ShapeDtypeStruct((N_pad, HW), jnp.float32),
                   jax.ShapeDtypeStruct((N_pad, 2 * nheads), jnp.float32)),
        in_specs=[vmem, vmem],
        out_specs=(vmem, vmem),
        compiler_params=cp_serial,
    )(xp, w_cat)

    # ---- kernel 1: all attention heads, row-tiled over query nodes ----
    wh_o = pl.pallas_call(
        functools.partial(_heads_kernel, alpha=alpha, P=P, nheads=nheads, H=H),
        out_shape=jax.ShapeDtypeStruct((N_pad, C), jnp.float32),
        grid=(nt,),
        in_specs=[
            pl.BlockSpec((N_pad, HW), lambda i: (0, 0)),              # Wh (keys), VMEM resident
            pl.BlockSpec((N_pad, 2 * nheads), lambda i: (0, 0)),      # e_dst for all nodes
            pl.BlockSpec((tN, 2 * nheads), lambda i: (i, 0)),         # e_src for this row tile
            pl.BlockSpec((P, tN, N_pad), lambda i: (0, i, 0)),        # edge mask tile (bf16)
            pl.BlockSpec((nheads, P, H, C), lambda i: (0, 0, 0, 0)),  # out-layer weight blocks
        ],
        out_specs=pl.BlockSpec((tN, C), lambda i: (i, 0)),
        compiler_params=cp_rows,
    )(wh_all, ep_all, ep_all, mask, wo_r)

    # ---- kernel 2: output attention layer + log_softmax, row-tiled ----
    out = pl.pallas_call(
        functools.partial(_out_kernel, alpha=alpha, P=P),
        out_shape=jax.ShapeDtypeStruct((N_pad, C), jnp.float32),
        grid=(nt,),
        in_specs=[
            pl.BlockSpec((N_pad, C), lambda i: (0, 0)),               # xcat@Wo for all nodes
            pl.BlockSpec((tN, C), lambda i: (i, 0)),                  # query rows
            pl.BlockSpec((P, tN, N_pad), lambda i: (0, i, 0)),        # edge mask tile (bf16)
            pl.BlockSpec((C, 2), lambda i: (0, 0)),
        ],
        out_specs=pl.BlockSpec((tN, C), lambda i: (i, 0)),
        compiler_params=cp_rows,
    )(wh_o, wh_o, mask, ao_pair)

    return out[:N]


# --------------------------------------------------------------------------
# Pure-JAX reference (faithful to the torch semantics, incl. edge chaining)
# --------------------------------------------------------------------------
def gat_reference(x, edge_attr, params, *, alpha):
    def layer(xx, edge, W, a_src, a_dst, concat):
        wh = xx @ W
        e = (wh * a_src).sum(-1, keepdims=True) + (wh * a_dst).sum(-1, keepdims=True).T
        e = jnp.where(e > 0, e, alpha * e)
        masked = jnp.where(edge > 0, e[None], NEG_INF)
        att = jax.nn.softmax(masked, axis=-1)
        hp = jnp.einsum('pij,jk->pik', att, wh)
        if concat:
            out = jnp.where(hp > 0, hp, jnp.expm1(hp))
            out = jnp.transpose(out, (1, 0, 2)).reshape(xx.shape[0], -1)
            return out, att
        return hp.mean(0), att

    feats, edge = [], edge_attr
    for (W, a_s, a_d) in params["heads"]:
        f, edge = layer(x, edge, W, a_s, a_d, True)
        feats.append(f)
    xcat = jnp.concatenate(feats, axis=1)
    Wo, ao_s, ao_d = params["out"]
    h, _ = layer(xcat, edge, Wo, ao_s, ao_d, False)
    h = jnp.where(h > 0, h, jnp.expm1(h))
    return jax.nn.log_softmax(h, axis=1)


def init_params(key, nfeat, nhid, nclass, P, nheads):
    """Deterministic xavier-uniform-style init (W:(in,out), a:(2*out,1) split)."""
    params = {"heads": [], "out": None}
    keys = jax.random.split(key, 2 * nheads + 2)

    def xavier(k, shape):
        fan_in, fan_out = shape[0], shape[1]
        lim = (6.0 / (fan_in + fan_out)) ** 0.5
        return jax.random.uniform(k, shape, jnp.float32, -lim, lim)

    for h in range(nheads):
        W = xavier(keys[2 * h], (nfeat, nhid))
        a = xavier(keys[2 * h + 1], (2 * nhid, 1))
        params["heads"].append((W, a[:nhid, 0][None, :], a[nhid:, 0][None, :]))

    din = nhid * nheads * P
    Wo = xavier(keys[-2], (din, nclass))
    ao = xavier(keys[-1], (2 * nclass, 1))
    params["out"] = (Wo, ao[:nclass, 0][None, :], ao[nclass:, 0][None, :])
    return params


if __name__ == "__main__":
    # Small shapes consistent with the module.
    N, nfeat, nhid, nclass = 16, 32, 8, 4
    P, nheads = 4, 2
    alpha = 0.2          # leakyrelu slope; dropout unused (eval mode)

    key = jax.random.PRNGKey(0)
    kx, ke, km, kp = jax.random.split(key, 4)

    x = jax.random.normal(kx, (N, nfeat), jnp.float32)
    # Sparse-ish positive edge features; diagonal forced positive so no row is fully masked.
    mask = (jax.random.bernoulli(km, 0.35, (P, N, N))).astype(jnp.float32)
    vals = jax.random.uniform(ke, (P, N, N), jnp.float32, 0.1, 1.0)
    edge_attr = mask * vals + jnp.eye(N, dtype=jnp.float32)[None, :, :]

    params = init_params(kp, nfeat, nhid, nclass, P, nheads)

    # tN=8 -> a 2-tile row grid, exercising the tiled/pipelined path.
    out = gat_forward(x, edge_attr, params, alpha=alpha, tN=8)
    out = jax.block_until_ready(out)

    assert out.shape == (N, nclass)
    # log_softmax rows should sum (in prob space) to ~1.
    assert bool(jnp.allclose(jnp.sum(jnp.exp(out), axis=1), 1.0, atol=1e-4))
    # Compare against the pure-JAX reference (exact softmax reciprocal now used,
    # so the tolerance is tight).
    ref = gat_reference(x, edge_attr, params, alpha=alpha)
    assert bool(jnp.allclose(out, ref, atol=2e-3)), float(jnp.max(jnp.abs(out - ref)))
    print("KERNEL_OK")
</pallas_src>

<mosaic_0001>
module attributes {stable_mosaic.version = 11 : i64} {
  func.func @_proj_kernel(%arg0: memref<16x32xf32, #tpu.memory_space<vmem>>, %arg1: memref<32x20xf32, #tpu.memory_space<vmem>>, %arg2: memref<16x16xf32, #tpu.memory_space<vmem>>, %arg3: memref<16x4xf32, #tpu.memory_space<vmem>>) attributes {dimension_semantics = [], scalar_prefetch = 0 : i64, scratch_operands = 0 : i64, tpu.core_type = #tpu.core_type<tc>} {
    %c0 = arith.constant 0 : index
    %c0_0 = arith.constant 0 : index
    %0 = vector.load %arg0[%c0, %c0_0] : memref<16x32xf32, #tpu.memory_space<vmem>>, vector<16x32xf32>
    %c0_1 = arith.constant 0 : index
    %c0_2 = arith.constant 0 : index
    %1 = vector.load %arg1[%c0_1, %c0_2] : memref<32x20xf32, #tpu.memory_space<vmem>>, vector<32x20xf32>
    %cst = arith.constant dense<0.000000e+00> : vector<16x20xf32>
    %2 = tpu.matmul %0, %1, %cst {dimension_numbers = #tpu.dot_dimension_numbers<[1], [0], [0], [1], [0, 0, 1, 1], [], []>} : vector<16x32xf32>, vector<32x20xf32>, vector<16x20xf32> -> vector<16x20xf32>
    %3 = vector.extract_strided_slice %2 {offsets = [0, 0], sizes = [16, 16], strides = [1, 1]} : vector<16x20xf32> to vector<16x16xf32>
    %c0_3 = arith.constant 0 : index
    %c0_4 = arith.constant 0 : index
    %4 = vector.load %arg2[%c0_3, %c0_4] : memref<16x16xf32, #tpu.memory_space<vmem>>, vector<16x16xf32>
    tpu.vector_store %arg2[%c0_3, %c0_4], %3 {strides = array<i32>} : memref<16x16xf32, #tpu.memory_space<vmem>>, vector<16x16xf32>,
    %5 = vector.extract_strided_slice %2 {offsets = [0, 16], sizes = [16, 4], strides = [1, 1]} : vector<16x20xf32> to vector<16x4xf32>
    %c0_5 = arith.constant 0 : index
    %c0_6 = arith.constant 0 : index
    %6 = vector.load %arg3[%c0_5, %c0_6] : memref<16x4xf32, #tpu.memory_space<vmem>>, vector<16x4xf32>
    tpu.vector_store %arg3[%c0_5, %c0_6], %5 {strides = array<i32>} : memref<16x4xf32, #tpu.memory_space<vmem>>, vector<16x4xf32>,
    return
  }
}

</mosaic_0001>

<bundles_post_ra>
// kernel: tpu_custom_call.1
= control target key start
LH: loop header
LB: loop body
LE: loop exit
PB: predicated region body
PF: predicated region fallthrough
CT: control target
= control target key end

     0   :  { %vm20_vm0 = vcmask 261120   ;;  %s232_s0 = inlined_call_operand.vmem [shape: f32[16,32], index: 0, kind: input, shape index: {}]   ;;  %s233_s1 = inlined_call_operand.vmem [shape: f32[32,20], index: 1, kind: input, shape index: {}]   ;;  %s234_s2 = inlined_call_operand.hbm [shape: f32[16,16], index: 2, kind: output, shape index: {0}]   ;;  %s235_s3 = inlined_call_operand.vmem [shape: f32[16,4], index: 3, kind: output, shape index: {1}]  }
   0x1   :  { %v19_v0 = vld [vmem:[%s233_s1 + $0x18] sm:$0xff]  ;;  %v18_v1 = vld [vmem:[%s233_s1 + $0x10] sm:$0xff]  ;;  %v14_v2 = vld [vmem:[%s232_s0] sm:$0xff] }
   0x2   :  { %144 = vmatprep.subr.mxu0 %v19_v0  ;;  %v17_v3 = vld [vmem:[%s233_s1 + $0x8] sm:$0xff]  ;;  %152 = vmatprep.mubr.msk.f32.mxu0 %vm20_vm0, %v14_v2 }
   0x3   :  { %145 = vmatpush3.msra.mxu0 %v19_v0 }
   0x4   :  { %9 = vsyncpa [#allocation3], 0  ;;  %146 = vmatprep.subr.mxu0 %v18_v1  ;;  %v16_v4 = vld [vmem:[%s233_s1] sm:$0xff]  ;;  %v15_v5 = vld [vmem:[%s232_s0 + $0x8] sm:$0xff]  ;;  %s181_s24 = smov [#allocation2]   ;;  %vm102_vm1 = vcmask 130048  }
   0x5   :  { %147 = vmatpush3.msra.mxu0 %v18_v1  ;;  %s121_s25 = sshll.u32 %s181_s24, 4  ;;  %s182_s26 = smov 112   ;;  %s122_s25 = int_to_ptr.vmem [resolvable:$true] %s121_s25 }
   0x6   :  { %148 = vmatprep.subr.mxu0 %v17_v3  ;;  %s159_s1 = scalar_lea.vmem %s122_s25, 256  ;;  %p164_p1 = scmp.lt.s32.totalorder %s122_s25, %s122_s25 }
   0x7   :  { %149 = vmatpush3.msra.mxu0 %v17_v3  ;;  %p160_p0 = scmp.ne.s32.totalorder %s122_s25, %s159_s1  ;;  %p165_p2 = scmp.lt.s32.totalorder %s159_s1, %s159_s1 }
   0x8   :  { %150 = vmatprep.subr.mxu0 %v16_v4 }
   0x9   :  { %151 = vmatpush3.msra.mxu0 %v16_v4  ;;  %p166_p3 = por %p165_p2, %p164_p1 }
   0xa   :  { %153 = vmatmul.mubr.msk.f32.vlgmr.msra.gmra.mxu0 %vm20_vm0, %v15_v5 }
   0xb   :  { %p167_p4 = pnand %p166_p3, %p160_p0 }
  0xca   :  { %v154_v6 = vpop.f32.mrf.mxu0 }
  0xcb   :  { %104 = vst.msk [vmem:[#allocation2 + $0x8] sm:$0xff] %vm102_vm1, %v154_v6 }
  0xcc   :  { %v93_v7 = vpop.f32.mrf.mxu0 }
  0xcd   :  { %103 = vst.msk [vmem:[#allocation2] sm:$0xff] %vm102_vm1, %v93_v7  ;;  %107 = vrot.lane.b32.xlu0 %v93_v7, %s182_s26 }
  0xce   :  { %170 = shalt.err (!%p167_p4)
}
  0xcf   :  { %s183_s0 = smov 128   ;;  %s184_s27 = smov 8   ;;  %vm113_vm2 = vcmask 31744  }
  0xd0   :  { %127 = dma.vmem_to_hbm [thread:$0]  %s122_s25, 256, %s234_s2, [#allocation3], %s183_s0, %s183_s0, %s184_s27  }
  0xd1   :  { %109 = vrot.lane.b32.xlu0 %v154_v6, %s182_s26 }
 0x13f   :  { %v108_v8 = vpop.permute.xlu0 %107 }
 0x140   :  { %114 = vst.msk [vmem:[%s235_s3] sm:$0xff] %vm113_vm2, %v108_v8 }
 0x143   :  { %v110_v9 = vpop.permute.xlu0 %109 }
 0x144   :  { %115 = vst.msk [vmem:[%s235_s3 + $0x8] sm:$0xff] %vm113_vm2, %v110_v9 }
 0x145   :  { %179 = dma.done.wait [#allocation3], 256  }
 0x146   :  { %180 = vsyncadd [#allocation3], 4294967040 }
 0x147   :  { %135 = vsyncpa [#allocation3], 1 }

</bundles_post_ra>
